<compile_context>
chip_gen: v6e
topology: v6e:2x2x1
jax: 0.10.0
libtpu: 0.0.40
codegen_flags: <defaults>
</compile_context>

<pallas_src>
import math

import jax
import jax.numpy as jnp
from jax.experimental import pallas as pl
from jax.experimental.pallas import tpu as pltpu


def _sinusoidal_pos_emb_kernel(x_ref, w_ref, out_ref):
    """out = sin(x * freqs + phase), lane-packed.

    x_ref:   (TB, k)   f32  k timesteps packed per output row (k = 128//dim for
                            small dim when it divides B, else 1).
    w_ref:   (k+1, L)  f32  resident constants: rows 0..k-1 = block-diagonal
                            freqs (row j nonzero only on lanes [j*dim,(j+1)*dim));
                            row k = phase (0 on sin half, pi/2 on cos half, tiled).
    out_ref: (TB, L)        [sin | cos] per packed timestep; one lane-dense store.
    """
    x = x_ref[...]
    w = w_ref[...]
    k = x.shape[1]
    emb = w[k:k + 1, :]                                 # phase row -> broadcasts to (TB, L)
    for j in range(k):                                  # unrolled; k is a trace-time Python int
        emb = emb + x[:, j:j + 1] * w[j:j + 1, :]       # exact f32 broadcast-FMA on the VPU
    # Padded tail rows of a boundary block compute sin() of whatever padding Pallas
    # fetched; those rows are clipped on writeback — intentional, do not mask.
    out_ref[...] = jnp.sin(emb).astype(out_ref.dtype)   # EUP sin + one lane-dense store


def _round_up(n, m):
    return ((n + m - 1) // m) * m


def sinusoidal_pos_emb(x, dim, *, out_dtype=jnp.float32, max_block_rows=4096):
    """Pallas equivalent of SinusoidalPosEmb(dim)(x) for x of shape (B,)."""
    assert x.ndim == 1, "expected a 1-D batch of timesteps"
    assert dim % 2 == 0, "dim must be even (sin|cos halves)"
    assert dim >= 4, "dim must be >= 4 so that half_dim - 1 > 0"
    B = x.shape[0]
    half_dim = dim // 2
    scale = math.log(10000.0) / (half_dim - 1)

    # Lane-packing factor: pack k timesteps per output row so the stored row is
    # 128 lanes wide (unmasked vst).  Fall back to k=1 if dim doesn't divide 128
    # or B isn't divisible (masked stores, still correct).
    k = 1
    if dim < 128 and 128 % dim == 0:
        for cand in range(128 // dim, 0, -1):
            if B % cand == 0:
                k = cand
                break
    L = k * dim
    rows = B // k

    # Compile-time constants (built once in the wrapper, resident across grid steps).
    j_idx = jnp.arange(dim, dtype=jnp.int32)
    freqs = jnp.exp(-scale * (j_idx % half_dim).astype(jnp.float32))               # (dim,)
    phase = jnp.where(j_idx < half_dim, 0.0, math.pi / 2.0).astype(jnp.float32)    # (dim,)
    eye = jnp.eye(k, dtype=jnp.float32)
    w_freq = (eye[:, :, None] * freqs[None, None, :]).reshape(k, L)                # block-diag freqs
    w_aug = jnp.concatenate([w_freq, jnp.tile(phase, k)[None, :]], axis=0)         # (k+1, L)

    x2d = x.astype(jnp.float32).reshape(rows, k)

    # Tile sizing: byte-budget governed, rounded to the out_dtype's sublane packing.
    # 6 MiB tile * 2 (double-buffer) + tiny x/constant buffers fits v5e's 16 MiB
    # scoped-VMEM default and is far under v6e/v7x limits — no vmem override needed.
    itemsize = jnp.dtype(out_dtype).itemsize
    sub = max(8, 32 // itemsize)                  # f32 -> 8 sublanes, bf16 -> 16
    tile_budget = 6 * 1024 * 1024
    bytes_per_row = L * itemsize
    tb = max(sub, (tile_budget // bytes_per_row) // sub * sub)
    tb = min(tb, max_block_rows)
    if rows <= tb:
        if rows * bytes_per_row >= 512 * 1024 and rows >= 2 * sub:
            # Large single-tile batch: split into 2 grid steps so the "parallel"
            # axis can be sharded across v7x's two TensorCores (no-op on v5e/v6e).
            tb = _round_up(pl.cdiv(rows, 2), sub)
        else:
            tb = rows                              # block == full array extent (always legal)
    grid = (pl.cdiv(rows, tb),)

    out2d = pl.pallas_call(
        _sinusoidal_pos_emb_kernel,
        out_shape=jax.ShapeDtypeStruct((rows, L), out_dtype),
        grid=grid,
        in_specs=[
            pl.BlockSpec((tb, k), lambda i: (i, 0)),        # batch tile of packed timesteps
            pl.BlockSpec((k + 1, L), lambda i: (0, 0)),     # resident freqs+phase table
        ],
        out_specs=pl.BlockSpec((tb, L), lambda i: (i, 0)),
        compiler_params=pltpu.CompilerParams(
            dimension_semantics=("parallel",),              # shard batch tiles on v7x's 2 TCs
        ),
    )(x2d, w_aug)

    return out2d.reshape(B, dim)


def _reference(x, dim):
    half_dim = dim // 2
    emb = math.log(10000.0) / (half_dim - 1)
    emb = jnp.exp(jnp.arange(half_dim, dtype=jnp.float32) * -emb)
    emb = x[:, None].astype(jnp.float32) * emb[None, :]
    return jnp.concatenate([jnp.sin(emb), jnp.cos(emb)], axis=-1)


if __name__ == "__main__":
    key = jax.random.PRNGKey(0)
    k0, k1, k2 = jax.random.split(key, 3)

    # Main demo: small shape, dim < 128 exercises the lane-packed path (k = 4).
    B, dim = 8, 32
    x = jax.random.randint(k0, (B,), 0, 100).astype(jnp.float32)
    out = jax.block_until_ready(sinusoidal_pos_emb(x, dim))
    ref = _reference(x, dim)
    assert out.shape == (B, dim) and out.dtype == jnp.float32
    # cos half is sin(theta + pi/2): O(ulp(theta)) ~ 1e-5 deviation for theta < 1e2.
    assert jnp.allclose(out, ref, atol=1e-4, rtol=1e-5), "mismatch vs reference (packed path)"

    # dim >= 128 path (k = 1, lane-dense by construction).
    B2, dim2 = 64, 256
    x2 = jax.random.randint(k1, (B2,), 0, 100).astype(jnp.float32)
    out2 = jax.block_until_ready(sinusoidal_pos_emb(x2, dim2))
    assert jnp.allclose(out2, _reference(x2, dim2), atol=1e-4, rtol=1e-5), "mismatch (k=1 path)"

    # Multi-tile path: large batch splits into >= 2 grid steps with a padded tail block.
    B3, dim3 = 1900, 128
    x3 = jax.random.randint(k2, (B3,), 0, 100).astype(jnp.float32)
    out3 = jax.block_until_ready(sinusoidal_pos_emb(x3, dim3))
    assert jnp.allclose(out3, _reference(x3, dim3), atol=1e-4, rtol=1e-5), "mismatch (multi-tile)"

    # bf16 output smoke test (math stays f32; only the store narrows).
    out_bf16 = jax.block_until_ready(sinusoidal_pos_emb(x, dim, out_dtype=jnp.bfloat16))
    assert out_bf16.dtype == jnp.bfloat16
    assert jnp.allclose(out_bf16.astype(jnp.float32), ref, atol=1e-2), "mismatch (bf16 store)"

    print("KERNEL_OK")
</pallas_src>

<mosaic_0001>
module attributes {stable_mosaic.version = 11 : i64} {
  func.func @_sinusoidal_pos_emb_kernel(%arg0: i32, %arg1: memref<2x4xf32, #tpu.memory_space<vmem>>, %arg2: memref<5x128xf32, #tpu.memory_space<vmem>>, %arg3: memref<2x128xf32, #tpu.memory_space<vmem>>) attributes {dimension_semantics = [#tpu.dimension_semantics<parallel>], iteration_bounds = array<i64: 1>, scalar_prefetch = 0 : i64, scratch_operands = 0 : i64, tpu.core_type = #tpu.core_type<tc>, window_params = [{transform_indices = @transform_0, window_bounds = array<i64: 2, 4>}, {pipeline_mode = #tpu.pipeline_mode<synchronous>, transform_indices = @transform_1, window_bounds = array<i64: 5, 128>}, {transform_indices = @transform_2, window_bounds = array<i64: 2, 128>}]} {
    %c0 = arith.constant 0 : index
    %c0_0 = arith.constant 0 : index
    %0 = vector.load %arg1[%c0, %c0_0] : memref<2x4xf32, #tpu.memory_space<vmem>>, vector<2x4xf32>
    %c0_1 = arith.constant 0 : index
    %c0_2 = arith.constant 0 : index
    %1 = vector.load %arg2[%c0_1, %c0_2] : memref<5x128xf32, #tpu.memory_space<vmem>>, vector<5x128xf32>
    %2 = vector.extract_strided_slice %1 {offsets = [4, 0], sizes = [1, 128], strides = [1, 1]} : vector<5x128xf32> to vector<1x128xf32>
    %3 = vector.extract_strided_slice %0 {offsets = [0, 0], sizes = [2, 1], strides = [1, 1]} : vector<2x4xf32> to vector<2x1xf32>
    %4 = vector.extract_strided_slice %1 {offsets = [0, 0], sizes = [1, 128], strides = [1, 1]} : vector<5x128xf32> to vector<1x128xf32>
    %5 = vector.broadcast %3 : vector<2x1xf32> to vector<2x128xf32>
    %6 = vector.broadcast %4 : vector<1x128xf32> to vector<2x128xf32>
    %7 = arith.mulf %5, %6 : vector<2x128xf32>
    %8 = vector.broadcast %2 : vector<1x128xf32> to vector<2x128xf32>
    %9 = arith.addf %8, %7 : vector<2x128xf32>
    %10 = vector.extract_strided_slice %0 {offsets = [0, 1], sizes = [2, 1], strides = [1, 1]} : vector<2x4xf32> to vector<2x1xf32>
    %11 = vector.extract_strided_slice %1 {offsets = [1, 0], sizes = [1, 128], strides = [1, 1]} : vector<5x128xf32> to vector<1x128xf32>
    %12 = vector.broadcast %10 : vector<2x1xf32> to vector<2x128xf32>
    %13 = vector.broadcast %11 : vector<1x128xf32> to vector<2x128xf32>
    %14 = arith.mulf %12, %13 : vector<2x128xf32>
    %15 = arith.addf %9, %14 : vector<2x128xf32>
    %16 = vector.extract_strided_slice %0 {offsets = [0, 2], sizes = [2, 1], strides = [1, 1]} : vector<2x4xf32> to vector<2x1xf32>
    %17 = vector.extract_strided_slice %1 {offsets = [2, 0], sizes = [1, 128], strides = [1, 1]} : vector<5x128xf32> to vector<1x128xf32>
    %18 = vector.broadcast %16 : vector<2x1xf32> to vector<2x128xf32>
    %19 = vector.broadcast %17 : vector<1x128xf32> to vector<2x128xf32>
    %20 = arith.mulf %18, %19 : vector<2x128xf32>
    %21 = arith.addf %15, %20 : vector<2x128xf32>
    %22 = vector.extract_strided_slice %0 {offsets = [0, 3], sizes = [2, 1], strides = [1, 1]} : vector<2x4xf32> to vector<2x1xf32>
    %23 = vector.extract_strided_slice %1 {offsets = [3, 0], sizes = [1, 128], strides = [1, 1]} : vector<5x128xf32> to vector<1x128xf32>
    %24 = vector.broadcast %22 : vector<2x1xf32> to vector<2x128xf32>
    %25 = vector.broadcast %23 : vector<1x128xf32> to vector<2x128xf32>
    %26 = arith.mulf %24, %25 : vector<2x128xf32>
    %27 = arith.addf %21, %26 : vector<2x128xf32>
    %28 = math.sin %27 : vector<2x128xf32>
    %c0_3 = arith.constant 0 : index
    %c0_4 = arith.constant 0 : index
    %29 = vector.load %arg3[%c0_3, %c0_4] : memref<2x128xf32, #tpu.memory_space<vmem>>, vector<2x128xf32>
    tpu.vector_store %arg3[%c0_3, %c0_4], %28 {strides = array<i32>} : memref<2x128xf32, #tpu.memory_space<vmem>>, vector<2x128xf32>,
    return
  }
  func.func @transform_0(%arg0: i32) -> (i32, i32) {
    %c0_i32 = arith.constant 0 : i32
    %c0_i32_0 = arith.constant 0 : i32
    return %arg0, %c0_i32 : i32, i32
  }
  func.func @transform_1(%arg0: i32) -> (i32, i32) {
    %c0_i32 = arith.constant 0 : i32
    %c0_i32_0 = arith.constant 0 : i32
    %c0_i32_1 = arith.constant 0 : i32
    return %c0_i32, %c0_i32_0 : i32, i32
  }
  func.func @transform_2(%arg0: i32) -> (i32, i32) {
    %c0_i32 = arith.constant 0 : i32
    %c0_i32_0 = arith.constant 0 : i32
    return %arg0, %c0_i32 : i32, i32
  }
}

</mosaic_0001>

<bundles_post_ra>
// kernel: tpu_custom_call.1
= control target key start
LH: loop header
LB: loop body
LE: loop exit
PB: predicated region body
PF: predicated region fallthrough
CT: control target
= control target key end

     0   :  { %7 = vsyncpa [#allocation3], 0  ;;  %s358_s0 = inlined_call_operand.hbm [shape: f32[2,4], index: 0, kind: input, shape index: {}]   ;;  %s359_s1 = inlined_call_operand.hbm [shape: f32[5,128], index: 1, kind: input, shape index: {}]   ;;  %s360_s2 = inlined_call_operand.hbm [shape: f32[2,128], index: 2, kind: output, shape index: {}]  }
   0x1   :  { %8 = vsyncpa [#allocation6], 0 }
   0x2   :  { %9 = vsyncpa [#allocation4], 0  ;;  %s300_s9 = smov [#allocation2]   ;;  %s301_s11 = smov [#allocation5]  }
   0x3   :  { %s16_s10 = sshll.u32 %s300_s9, 4  ;;  %s26_s12 = sshll.u32 %s301_s11, 4  ;;  %s17_s10 = int_to_ptr.vmem [resolvable:$true] %s16_s10  ;;  %s27_s12 = int_to_ptr.vmem [resolvable:$true] %s26_s12 }
   0x4   :  { %s242_s13 = scalar_lea.vmem %s17_s10, 32  ;;  %p247_p1 = scmp.lt.s32.totalorder %s17_s10, %s17_s10 }
   0x5   :  { %p243_p0 = scmp.ne.s32.totalorder %s17_s10, %s242_s13  ;;  %p248_p2 = scmp.lt.s32.totalorder %s242_s13, %s242_s13 }
   0x7   :  { %p249_p3 = por %p248_p2, %p247_p1 }
   0x9   :  { %p250_p4 = pnand %p249_p3, %p243_p0 }
   0xb   :  { %253 = shalt.err (!%p250_p4)
}
   0xc   :  { %19 = dma.hbm_to_vmem [thread:$0]  %s358_s0, 32, %s17_s10, [#allocation3]  }
   0xd   :  { %s262_s16 = scalar_lea.vmem %s27_s12, 128  ;;  %p267_p6 = scmp.lt.s32.totalorder %s27_s12, %s27_s12 }
   0xe   :  { %p263_p5 = scmp.ne.s32.totalorder %s27_s12, %s262_s16  ;;  %p268_p7 = scmp.lt.s32.totalorder %s262_s16, %s262_s16 }
  0x10   :  { %p269_p8 = por %p268_p7, %p267_p6 }
  0x12   :  { %p270_p9 = pnand %p269_p8, %p263_p5 }
  0x14   :  { %273 = shalt.err (!%p270_p9)
}
  0x15   :  { %29 = dma.hbm_to_vmem [thread:$0]  %s359_s1, 128, %s27_s12, [#allocation6]  }
  0x16   :  { %294 = dma.done.wait [#allocation3], 32  }
  0x17   :  { %295 = vsyncadd [#allocation3], 4294967264 }
  0x18   :  { %296 = dma.done.wait [#allocation6], 128  }
  0x19   :  { %297 = vsyncadd [#allocation6], 4294967168  ;;  %v302_v0 = vmov 0   ;;  %v303_v1 = vmov 2   ;;  %v36_v2 = vld [vmem:[#allocation2] sm:$0x3]  ;;  %v43_v5 = vlaneseq }
  0x1a   :  { %225 = vset.pattern.permute.xlu0 %v302_v0  ;;  %227 = vset.pattern.permute.xlu1 %v303_v1  ;;  %v304_v3 = vmov 1   ;;  %v305_v4 = vmov 3   ;;  %v37_v8 = vld [vmem:[#allocation5] sm:$0x1f]  ;;  %v306_v41 = vmov 2102212464  }
  0x1b   :  { %40 = vperm.xlu0 %225, %v36_v2   ;;  %64 = vperm.xlu1 %227, %v36_v2   ;;  %v44_v6 = vshrl.u32 %v43_v5, 7  ;;  %v307_v43 = vmov 920167782   ;;  %v308_v47 = vmov 1326507024   ;;  %s312_s0 = smov [#allocation7]  }
  0x1c   :  { %v309_v49 = vmov 683565275   ;;  %v310_v51 = vmov 2475754826   ;;  %v311_v54 = vmov 2131351028  }
  0x1d   :  { %v45_v7 = vsub.s32 0, %v44_v6  ;;  %v50_v10 = vsub.s32 4, %v44_v6  ;;  %v59_v11 = vsub.s32 1, %v44_v6  ;;  %v69_v13 = vsub.s32 2, %v44_v6  ;;  %s194_s1 = sshll.u32 %s312_s0, 4  ;;  %s195_s1 = int_to_ptr.vmem [resolvable:$true] %s194_s1 }
  0x1e   :  { %v79_v15 = vsub.s32 3, %v44_v6  ;;  %s274_s19 = scalar_lea.vmem %s195_s1, 32  ;;  %p279_p11 = scmp.lt.s32.totalorder %s195_s1, %s195_s1 }
  0x1f   :  { %226 = vset.pattern.permute.xlu0 %v304_v3  ;;  %228 = vset.pattern.permute.xlu1 %v305_v4  ;;  %v46_v9 = vrot.slane %v37_v8, %v45_v7  ;;  %v51_v16 = vrot.slane %v37_v8, %v50_v10  ;;  %v60_v18 = vrot.slane %v37_v8, %v59_v11  ;;  %p275_p10 = scmp.ne.s32.totalorder %s195_s1, %s274_s19  ;;  %p280_p12 = scmp.lt.s32.totalorder %s274_s19, %s274_s19 }
  0x20   :  { %54 = vperm.xlu0 %226, %v36_v2   ;;  %74 = vperm.xlu1 %228, %v36_v2   ;;  %v70_v19 = vrot.slane %v37_v8, %v69_v13  ;;  %v80_v20 = vrot.slane %v37_v8, %v79_v15 }
  0x21   :  { %p281_p13 = por %p280_p12, %p279_p11 }
  0x23   :  { %p282_p0 = pnand %p281_p13, %p275_p10 }
  0x24   :  { %229 = vset.pattern.permute.xlu0 %v305_v4 }
  0x96   :  { %v41_v12 = vpop.permute.xlu0 %40  ;;  %v65_v14 = vpop.permute.xlu1 %64 }
  0x97   :  { %v47_v17 = vmul.f32 %v46_v9, %v41_v12  ;;  %v71_v25 = vmul.f32 %v70_v19, %v65_v14 }
  0x99   :  { %v52_v23 = vadd.f32 %v51_v16, %v47_v17 }
  0x9b   :  { %v55_v21 = vpop.permute.xlu0 %54  ;;  %v75_v22 = vpop.permute.xlu1 %74 }
  0x9c   :  { %v61_v24 = vmul.f32 %v60_v18, %v55_v21  ;;  %v81_v27 = vmul.f32 %v80_v20, %v75_v22 }
  0x9e   :  { %v62_v26 = vadd.f32 %v61_v24, %v52_v23 }
  0xa0   :  { %v72_v28 = vadd.f32 %v71_v25, %v62_v26 }
  0xa2   :  { %v334_v29 = vadd.f32 %v81_v27, %v72_v28 }
  0xa4   :  { %v86_v30 = vand.u32 2139095040, %v334_v29  ;;  %v83_v31 = vand.u32 2147483647, %v334_v29  ;;  %vm85_vm7 = vcmp.lt.s32.totalorder %v334_v29, 0  ;;  %vm175_vm12 = vweird.f32 %v334_v29 }
  0xa6   :  { %v87_v32 = vshrl.u32 %v86_v30, 23  ;;  %v90_v34 = vand.u32 8388607, %v83_v31  ;;  %vm84_vm8 = vcmp.le.f32.partialorder %v83_v31, 0.7853982 }
  0xa8   :  { %v204_v33 = vadd.s32 4294967169, %v87_v32  ;;  %v91_v37 = vor.u32 8388608, %v90_v34 }
  0xaa   :  { %v93_v35 = vadd.s32 1, %v204_v33  ;;  %v131_v45 = vshll.u32 %v91_v37, 8 }
  0xac   :  { %vm94_vm0 = vcmp.gt.s32.totalorder %v93_v35, 0 }
  0xad   :  { %v95_v36 = vsel %vm94_vm0, %v93_v35, 0 }
  0xae   :  { %v97_v38 = vand.u32 31, %v95_v36  ;;  %v96_v39 = vshrl.u32 %v95_v36, 5 }
  0xb0   :  { %v98_v40 = vsub.s32 32, %v97_v38  ;;  %v109_v42 = vshll.u32 %v306_v41, %v97_v38  ;;  %v112_v44 = vshll.u32 %v307_v43, %v97_v38  ;;  %v100_v50 = vshll.u32 %v309_v49, %v97_v38 }
  0xb1   :  { %v103_v53 = vshll.u32 %v310_v51, %v97_v38  ;;  %v106_v56 = vshll.u32 %v311_v54, %v97_v38  ;;  %vm118_vm1 = vcmp.lt.s32.totalorder %v96_v39, 4  ;;  %vm115_vm2 = vcmp.lt.s32.totalorder %v96_v39, 1 }
  0xb2   :  { %v110_v46 = vshrl.u32 %v307_v43, %v98_v40  ;;  %v113_v48 = vshrl.u32 %v308_v47, %v98_v40  ;;  %v101_v52 = vshrl.u32 %v310_v51, %v98_v40  ;;  %v104_v55 = vshrl.u32 %v311_v54, %v98_v40 }
  0xb3   :  { %v107_v57 = vshrl.u32 %v306_v41, %v98_v40  ;;  %v99_v61 = vshrl.u32 %v309_v49, %v98_v40  ;;  %vm116_vm3 = vcmp.lt.s32.totalorder %v96_v39, 2  ;;  %vm117_vm4 = vcmp.lt.s32.totalorder %v96_v39, 3 }
  0xb4   :  { %v111_v58 = vor.u32 %v110_v46, %v109_v42  ;;  %v114_v59 = vor.u32 %v113_v48, %v112_v44  ;;  %v102_v60 = vor.u32 %v101_v52, %v100_v50  ;;  %v105_v62 = vor.u32 %v104_v55, %v103_v53 }
  0xb5   :  { %v108_v63 = vor.u32 %v107_v57, %v106_v56 }
  0xb6   :  { %v124_v0 = vsel %vm118_vm1, %v111_v58, 920167782  ;;  %v128_v1 = vsel %vm118_vm1, %v114_v59, 1326507024  ;;  %v123_v3 = vsel %vm115_vm2, %v102_v60, %v105_v62  ;;  %v119_v6 = vsel %vm115_vm2, %v99_v61, %v102_v60 }
  0xb7   :  { %v120_v2 = vsel %vm118_vm1, %v108_v63, 2102212464  ;;  %v125_v4 = vsel %vm117_vm4, %v108_v63, %v124_v0  ;;  %v127_v5 = vsel %vm115_vm2, %v105_v62, %v108_v63  ;;  %v129_v9 = vsel %vm117_vm4, %v111_v58, %v128_v1 }
  0xb8   :  { %v121_v7 = vsel %vm117_vm4, %v105_v62, %v120_v2  ;;  %v126_v8 = vsel %vm116_vm3, %v123_v3, %v125_v4  ;;  %v130_v10 = vsel %vm116_vm3, %v127_v5, %v129_v9 }
  0xb9   :  { %v340_v11 = vmul.u32.u64.low %v131_v45, %v126_v8  ;;  %v341_v12 = vmul.u32.u64.high %v131_v45, %v126_v8, %v340_v11  ;;  %v343_v13 = vmul.u32.u64.low %v131_v45, %v130_v10  ;;  %v344_v14 = vmul.u32.u64.high %v131_v45, %v130_v10, %v343_v13 }
  0xba   :  { %v122_v15 = vsel %vm116_vm3, %v119_v6, %v121_v7 }
  0xbb   :  { %v141_v16 = vadd.s32 1, %v341_v12  ;;  %v138_v17 = vmul.u32 %v131_v45, %v122_v15  ;;  %vm140_vm5 = vc.u32 %v344_v14, %v340_v11  ;;  %v139_v30 = vadd.s32 %v340_v11, %v344_v14 }
  0xbd   :  { %v142_v18 = vsel %vm140_vm5, %v141_v16, %v341_v12 }
  0xbe   :  { %v143_v19 = vadd.s32 %v142_v18, %v138_v17 }
  0xc0   :  { %v144_v20 = vadd.s32 536870912, %v143_v19 }
  0xc2   :  { %v145_v21 = vshrl.u32 %v144_v20, 30 }
  0xc4   :  { %v146_v22 = vshll.u32 %v145_v21, 30  ;;  %v169_v44 = vsub.s32 4, %v145_v21 }
  0xc6   :  { %v147_v23 = vsub.s32 %v143_v19, %v146_v22  ;;  %v170_v47 = vsel %vm85_vm7, %v169_v44, %v145_v21 }
  0xc7   :  { %v172_v48 = vsel %vm84_vm8, 0, %v170_v47 }
  0xc8   :  { %v149_v24 = vsub.s32 0, %v147_v23  ;;  %v176_v49 = vadd.s32 3, %v172_v48 }
  0xca   :  { %v205_v25 = vmin.u32 %v149_v24, %v147_v23  ;;  %v177_v50 = vand.u32 3, %v176_v49 }
  0xcc   :  { %v151_v26 = vclz %v205_v25  ;;  %vm182_vm9 = vcmp.eq.s32.totalorder %v177_v50, 2  ;;  %vm179_vm10 = vcmp.eq.s32.totalorder %v177_v50, 0  ;;  %vm178_vm11 = vcmp.lt.s32.totalorder %v177_v50, 2 }
  0xce   :  { %v206_v27 = vadd.s32 4294967294, %v151_v26 }
  0xd0   :  { %vm207_vm6 = vcmp.lt.s32.totalorder %v206_v27, 0 }
  0xd1   :  { %v154_v28 = vsel %vm207_vm6, 0, %v206_v27 }
  0xd2   :  { %v155_v32 = vsub.s32 32, %v154_v28  ;;  %v159_v33 = vsub.s32 4294967266, %v154_v28  ;;  %v156_v34 = vshll.u32 %v147_v23, %v154_v28 }
  0xd4   :  { %v157_v35 = vshrl.u32 %v139_v30, %v155_v32  ;;  %v160_v36 = vadd.s32 127, %v159_v33 }
  0xd6   :  { %v158_v37 = vor.u32 %v157_v35, %v156_v34  ;;  %v161_v38 = vshll.u32 %v160_v36, 23 }
  0xd8   :  { %v162_v39 = vor.u32 4788187, %v161_v38  ;;  %v165_v41 = vcvt.s32.f32 %v158_v37 }
  0xda   :  { %v163_v40 = vand.u32 2147483647, %v162_v39 }
  0xdc   :  { %v166_v42 = vmul.f32 %v165_v41, %v163_v40 }
  0xde   :  { %v167_v43 = vxor.u32 2147483648, %v166_v42 }
  0xe0   :  { %v168_v45 = vsel %vm85_vm7, %v167_v43, %v166_v42 }
  0xe1   :  { %v171_v46 = vsel %vm84_vm8, %v334_v29, %v168_v45 }
  0xe2   :  { %230 = vcosq.f32 %v171_v46 }
  0xe3   :  { %232 = vsinq.f32 %v171_v46 }
  0xef   :  { %v231_v51 = vpop.eup %230 }
  0xf0   :  { %v233_v52 = vpop.eup %232  ;;  %v183_v53 = vxor.u32 2147483648, %v231_v51 }
  0xf1   :  { %v180_v54 = vxor.u32 2147483648, %v233_v52 }
  0xf2   :  { %v184_v55 = vsel %vm182_vm9, %v183_v53, %v233_v52 }
  0xf3   :  { %v181_v31 = vsel %vm179_vm10, %v231_v51, %v180_v54 }
  0xf4   :  { %v185_v56 = vsel %vm178_vm11, %v181_v31, %v184_v55 }
  0xf5   :  { %v186_v57 = vsel %vm175_vm12, nan, %v185_v56 }
  0xf6   :  { %187 = vst [vmem:[#allocation7] sm:$0x3] %v186_v57 }
  0xf7   :  { %285 = shalt.err (!%p282_p0)
}
  0xf8   :  { %197 = dma.vmem_to_hbm [thread:$0]  %s195_s1, 32, %s360_s2, [#allocation4]  }
  0xf9   :  { %298 = dma.done.wait [#allocation4], 32  }
  0xfa   :  { %299 = vsyncadd [#allocation4], 4294967264 }
  0xfb   :  { %201 = vsyncpa [#allocation3], 1 }
  0xfc   :  { %202 = vsyncpa [#allocation6], 1 }
  0xfd   :  { %203 = vsyncpa [#allocation4], 1 }

</bundles_post_ra>
